<compile_context>
chip_gen: v5e
topology: v5e:2x2
jax: 0.10.0
libtpu: 0.0.40
codegen_flags: <defaults>
</compile_context>

<pallas_src>
import functools

import jax
import jax.numpy as jnp
from jax.experimental import pallas as pl
from jax.experimental.pallas import tpu as pltpu


def _divide_encode_kernel(x_ref, w_ref, o_ref, *, precision):
    # x_ref: (TB, TG*P)   lane-dense activation tile
    # w_ref: (TG*P, TG)   one diagonal band of the block-diagonal weight
    # o_ref: (TB, TG)     per-group sums for this (group-tile, batch-tile)
    o_ref[...] = jnp.dot(
        x_ref[...],
        w_ref[...],
        preferred_element_type=jnp.float32,
        precision=precision,
    ).astype(o_ref.dtype)


def _round_up(x: int, m: int) -> int:
    return -(-x // m) * m


def _round_down(x: int, m: int) -> int:
    return (x // m) * m


def _group_tile(G: int) -> int:
    # Tile the group axis only when it is large and cleanly divisible by a
    # lane-width multiple; otherwise a single dense band (TG == G).
    if G >= 256 and G % 128 == 0:
        return 128
    return G


def _vmem_budget_bytes() -> int:
    # Per-generation VMEM budget: ~3/4 of physical capacity, capped at 96 MiB
    # (=> ~48 MiB on v7x's 64 MiB/TC, 96 MiB on v5e/v6e's 128 MiB).
    cap = None
    try:
        cap = getattr(pltpu.get_tpu_info(), "vmem_capacity_bytes", None)
    except Exception:  # query unsupported / not on a TPU backend
        cap = None
    if not cap:
        cap = 64 * 1024 * 1024  # conservative: smallest per-core VMEM (v7x)
    cap = max(64 * 1024 * 1024, min(int(cap), 128 * 1024 * 1024))
    return min((cap * 3) // 4, 96 * 1024 * 1024)


def _batch_tile(B, band_k, TG, cdt_itemsize, out_itemsize, budget):
    """Largest sublane-aligned batch tile whose double-buffered pipeline fits
    the VMEM budget, capped so the grid has >= 2 batch tiles (v7x 2-TC split)."""
    if B <= 8:
        return B  # tiny batch: one full-extent block (always layout-legal)
    # Double-buffered x / out tiles + (small) double-buffered weight band.
    # TODO(synk): pin the resident weight band to a single buffer
    # (pipeline_mode=pl.Buffered(1)) if VMEM gets tight at very large TG*P.
    per_row = 2 * band_k * cdt_itemsize + 2 * TG * out_itemsize
    w_bytes = 2 * band_k * TG * cdt_itemsize
    avail = max(budget - w_bytes, per_row * 8)
    tb = max(8, _round_down(avail // per_row, 8))
    # >= 2 batch tiles so "parallel" can split across v7x's two TensorCores
    # (one extra ~0.35us grid step on single-TC v5e/v6e: noise).
    tb = min(tb, max(8, _round_up(pl.cdiv(B, 2), 8)), 2048)
    return tb


def prepare_weights(weights, compute_dtype=jnp.bfloat16):
    """Banded block-diagonal weight, shape (G//TG, TG*P, TG).

    banded[j, t*P + p, u] = weights[j*TG + t, p] if t == u else 0, so for a
    flattened activation row x (length N = G*P), multiplying each column slice
    of x by its diagonal band reproduces the per-group multiply-reduce exactly
    (the extra terms are exact zeros).  Hoisted out of the forward hot path:
    cache the result and rebuild only when `weights` changes.
    """
    G, P = weights.shape
    TG = _group_tile(G)
    ngb = G // TG
    w = weights.astype(compute_dtype).reshape(ngb, TG, P)
    eye = jnp.eye(TG, dtype=compute_dtype)
    banded = w[:, :, :, None] * eye[None, :, None, :]      # (ngb, TG, P, TG)
    return banded.reshape(ngb, TG * P, TG)


def divide_encode(x, weights, *, compute_dtype=jnp.bfloat16, banded_weights=None):
    """DivideEncode forward.

    x:       (..., num_inputs) activations; flattened to (B, N) like X.view(-1, G, P)
    weights: (num_groups, num_per_group)
    returns: (B, num_groups) float32 per-group sums of x * weights
    """
    G, P = weights.shape
    N = G * P
    x2 = x.reshape(-1, N)
    B = x2.shape[0]

    TG = _group_tile(G)
    ngb = G // TG
    band_k = TG * P

    if banded_weights is None:
        banded_weights = prepare_weights(weights, compute_dtype)
    banded_weights = banded_weights.astype(compute_dtype)
    assert banded_weights.shape == (ngb, band_k, TG)

    # bf16 inputs halve the x HBM traffic of this HBM-bound op (the cast fuses
    # into x's producer inside a larger jitted model); accumulation stays f32
    # via preferred_element_type and the output stays f32.  The pure-f32 path
    # uses Precision.HIGHEST so it matches f32 VPU semantics of the reference.
    x2 = x2.astype(compute_dtype)
    is_f32 = jnp.dtype(compute_dtype) == jnp.dtype(jnp.float32)
    precision = jax.lax.Precision.HIGHEST if is_f32 else None

    out_dtype = jnp.float32
    cdt_itemsize = jnp.dtype(compute_dtype).itemsize
    out_itemsize = jnp.dtype(out_dtype).itemsize

    budget = _vmem_budget_bytes()
    TB = _batch_tile(B, band_k, TG, cdt_itemsize, out_itemsize, budget)
    # Group-tile axis outer so each weight band is fetched once and stays
    # resident across the inner batch sweep; x/out blocks are all distinct.
    grid = (ngb, pl.cdiv(B, TB))

    cost = pl.CostEstimate(
        flops=2 * B * N * TG,  # only the diagonal band is ever multiplied
        transcendentals=0,
        bytes_accessed=(B * N * cdt_itemsize
                        + ngb * band_k * TG * cdt_itemsize
                        + B * G * out_itemsize),
    )

    kernel = functools.partial(_divide_encode_kernel, precision=precision)

    # TODO(synk): for tiny production shapes (e.g. G=8, B=2) the ~0.35us/step
    # pallas_call overhead and narrow (lane<128) output stores dominate; let
    # XLA fuse this op instead of calling the kernel in that regime.
    return pl.pallas_call(
        kernel,
        out_shape=jax.ShapeDtypeStruct((B, G), out_dtype),
        grid_spec=pltpu.PrefetchScalarGridSpec(
            num_scalar_prefetch=0,
            grid=grid,
            in_specs=[
                # x: batch-tiled rows, this group-tile's column slice (lane-dense).
                pl.BlockSpec((TB, band_k), lambda j, i: (i, j)),
                # weight: one diagonal band; index constant over the inner batch
                # axis so it is fetched once per band and stays resident.
                pl.BlockSpec((None, band_k, TG), lambda j, i: (j, 0, 0)),
            ],
            out_specs=pl.BlockSpec((TB, TG), lambda j, i: (i, j)),
        ),
        compiler_params=pltpu.CompilerParams(
            # Both axes independent; lets v7x's two TensorCores split the work.
            dimension_semantics=("parallel", "parallel"),
            vmem_limit_bytes=budget,
        ),
        cost_estimate=cost,
    )(x2, banded_weights)


def divide_encode_ref(x, weights):
    G, P = weights.shape
    xg = x.reshape(-1, G, P).astype(jnp.float32)
    return jnp.sum(xg * weights.astype(jnp.float32)[None], axis=2)


if __name__ == "__main__":
    key = jax.random.PRNGKey(0)
    k_x, k_w, k_x2, k_w2 = jax.random.split(key, 4)

    # --- Small shapes consistent with the module: num_inputs=32, P=4, B=2 ---
    B, num_inputs, num_per_group = 2, 32, 4
    num_groups = num_inputs // num_per_group  # 8
    x = jax.random.normal(k_x, (B, num_inputs), dtype=jnp.float32)
    # xavier_normal_-style init: std = sqrt(2 / (fan_in + fan_out))
    std = (2.0 / (num_per_group + num_groups)) ** 0.5
    weights = std * jax.random.normal(
        k_w, (num_groups, num_per_group), dtype=jnp.float32)

    ref = divide_encode_ref(x, weights)

    # Default bf16 compute path (f32 accumulation, f32 output).
    out = jax.block_until_ready(divide_encode(x, weights))
    assert out.shape == (B, num_groups)
    assert out.dtype == jnp.float32
    assert jnp.allclose(out, ref, atol=3e-2, rtol=3e-2)

    # Pure-f32 path (Precision.HIGHEST) matches the f32 reference tightly.
    out_f32 = jax.block_until_ready(
        divide_encode(x, weights, compute_dtype=jnp.float32))
    assert jnp.allclose(out_f32, ref, atol=1e-5, rtol=1e-5)

    # Larger-G case exercising the banded block-diagonal tiling (TG=128) and
    # the >=2-batch-tile grid split; weight band cached once per weight update.
    B2, G2, P2 = 64, 256, 4
    x_big = jax.random.normal(k_x2, (B2, G2 * P2), dtype=jnp.float32)
    std2 = (2.0 / (P2 + G2)) ** 0.5
    w_big = std2 * jax.random.normal(k_w2, (G2, P2), dtype=jnp.float32)
    banded_big = prepare_weights(w_big)  # hoisted out of the per-call hot path
    out_big = jax.block_until_ready(
        divide_encode(x_big, w_big, banded_weights=banded_big))
    assert out_big.shape == (B2, G2)
    assert jnp.allclose(out_big, divide_encode_ref(x_big, w_big),
                        atol=3e-2, rtol=3e-2)

    print("KERNEL_OK")
</pallas_src>

<mosaic_0001>
module attributes {stable_mosaic.version = 11 : i64} {
  func.func @_divide_encode_kernel(%arg0: i32, %arg1: i32, %arg2: memref<2x32xbf16, #tpu.memory_space<vmem>>, %arg3: memref<1x32x8xbf16, #tpu.memory_space<vmem>>, %arg4: memref<2x8xf32, #tpu.memory_space<vmem>>) attributes {dimension_semantics = [#tpu.dimension_semantics<parallel>, #tpu.dimension_semantics<parallel>], iteration_bounds = array<i64: 1, 1>, scalar_prefetch = 0 : i64, scratch_operands = 0 : i64, tpu.core_type = #tpu.core_type<tc>, window_params = [{transform_indices = @transform_0, window_bounds = array<i64: 2, 32>}, {transform_indices = @transform_1, window_bounds = array<i64: 1, 32, 8>}, {transform_indices = @transform_2, window_bounds = array<i64: 2, 8>}]} {
    %c0 = arith.constant 0 : index
    %c0_0 = arith.constant 0 : index
    %0 = vector.load %arg2[%c0, %c0_0] : memref<2x32xbf16, #tpu.memory_space<vmem>>, vector<2x32xbf16>
    %c0_1 = arith.constant 0 : index
    %c0_2 = arith.constant 0 : index
    %c0_3 = arith.constant 0 : index
    %1 = vector.load %arg3[%c0_1, %c0_2, %c0_3] : memref<1x32x8xbf16, #tpu.memory_space<vmem>>, vector<1x32x8xbf16>
    %2 = vector.shape_cast %1 : vector<1x32x8xbf16> to vector<32x8xbf16>
    %cst = arith.constant dense<0.000000e+00> : vector<2x8xf32>
    %3 = tpu.matmul %0, %2, %cst {dimension_numbers = #tpu.dot_dimension_numbers<[1], [0], [0], [1], [0, 0, 1, 1], [], []>} : vector<2x32xbf16>, vector<32x8xbf16>, vector<2x8xf32> -> vector<2x8xf32>
    %c0_4 = arith.constant 0 : index
    %c0_5 = arith.constant 0 : index
    %4 = vector.load %arg4[%c0_4, %c0_5] : memref<2x8xf32, #tpu.memory_space<vmem>>, vector<2x8xf32>
    tpu.vector_store %arg4[%c0_4, %c0_5], %3 {strides = array<i32>} : memref<2x8xf32, #tpu.memory_space<vmem>>, vector<2x8xf32>,
    return
  }
  func.func @transform_0(%arg0: i32, %arg1: i32) -> (i32, i32) {
    %c0_i32 = arith.constant 0 : i32
    return %arg1, %arg0 : i32, i32
  }
  func.func @transform_1(%arg0: i32, %arg1: i32) -> (i32, i32, i32) {
    %c0_i32 = arith.constant 0 : i32
    %c0_i32_0 = arith.constant 0 : i32
    %c0_i32_1 = arith.constant 0 : i32
    return %arg0, %c0_i32, %c0_i32_0 : i32, i32, i32
  }
  func.func @transform_2(%arg0: i32, %arg1: i32) -> (i32, i32) {
    %c0_i32 = arith.constant 0 : i32
    return %arg1, %arg0 : i32, i32
  }
}

</mosaic_0001>

<bundles_post_ra>
// kernel: tpu_custom_call.1
= control target key start
LH: loop header
LB: loop body
LE: loop exit
PB: predicated region body
PF: predicated region fallthrough
CT: control target
= control target key end

     0   :  { %s131_s0 = inlined_call_operand.vmem [shape: bf16[2,32], index: 0, kind: input, shape index: {}]   ;;  %s132_s1 = inlined_call_operand.vmem [shape: bf16[1,32,8], index: 1, kind: input, shape index: {}]   ;;  %s133_s2 = inlined_call_operand.hbm [shape: f32[2,8], index: 2, kind: output, shape index: {}]  }
   0x1   :  { %v75_v0 = vld [vmem:[%s132_s1 + $0x8] sm:$0xff] }
   0x2   :  { %7 = vsyncpa [#allocation3], 0  ;;  %40 = vmatpush.bf16.msra.mxu0 %v75_v0  ;;  %v74_v1 = vld [vmem:[%s132_s1] sm:$0xff]  ;;  %vm30_vm0 = vcmask 261120   ;;  %s103_s15 = smov [#allocation2]   ;;  %s56_s19 = sshll.u32 %s133_s2, 4  ;;  %s57_s19 = int_to_ptr.hbm [resolvable:$true] %s56_s19 }
   0x3   :  { %v13_v2 = vld [vmem:[%s131_s0] sm:$0x1]  ;;  %s54_s16 = sshll.u32 %s103_s15, 4  ;;  %vm47_vm1 = vcmask 58368   ;;  %s55_s16 = int_to_ptr.vmem [resolvable:$true] %s54_s16 }
   0x6   :  { %41 = vmatpush.bf16.msra.mxu0 %v74_v1 }
   0x9   :  { %73 = vmatmul.msk.bf16.vlgmr.msra.gmra.mxu0 %vm30_vm0, %v13_v2 }
  0x86   :  { %v43_v3 = vpop.f32.mrf.mxu0 }
  0x87   :  { %48 = vst.msk [vmem:[#allocation2] sm:$0x3] %vm47_vm1, %v43_v3 }
  0x88   :  { %59 = dma.vmem_to_hbm [thread:$0]  %s55_s16, 32, %s57_s19, [#allocation3]  }
  0x8e   :  { %v45_v4 = vpop.f32.mrf.mxu0 }
  0x8f   :  { %101 = dma.done.wait [#allocation3], 32  }
  0x90   :  { %102 = vsyncadd [#allocation3], 4294967264 }
  0x91   :  { %64 = vsyncpa [#allocation3], 1 }

</bundles_post_ra>
